<compile_context>
chip_gen: v7x
topology: tpu7x:2x2x1
jax: 0.10.0
libtpu: 0.0.40
codegen_flags: <defaults>
</compile_context>

<pallas_src>
import functools

import jax
import jax.numpy as jnp
import numpy as np
from jax.experimental import pallas as pl
from jax.experimental.pallas import tpu as pltpu


def _round_up(x, m):
    return ((x + m - 1) // m) * m


# ---------------------------------------------------------------------------
# Kernel: per-batch-tile fused MLP (folded bottleneck -> fused dual heads
#         -> packed logits|softmax|adv-logits block)
# ---------------------------------------------------------------------------
def mdd_mlp_kernel(pooled_ref, wf_ref, bf_ref, wh_ref, bh_ref, wo_ref, bo_ref,
                   feat_ref, pack_ref, *,
                   class_num, smax_off, approx_recip, compute_dtype):
    # fused backbone-projection + bottleneck Linear (BN eval-mode folded) -> ReLU
    pooled = pooled_ref[...].astype(compute_dtype)
    feat = jnp.maximum(
        jnp.dot(pooled, wf_ref[...], preferred_element_type=jnp.float32)
        + bf_ref[...], 0.0)
    feat_ref[...] = feat                        # [TB, Dp], lane-dense f32
    # TODO(synk): on v7x feat_ref could be stored bf16 to halve its HBM writeback.

    # both classifier heads fused: hidden [TB, 2*Wp] = (wc1 || wa1) -> ReLU
    h = jnp.maximum(
        jnp.dot(feat.astype(compute_dtype), wh_ref[...],
                preferred_element_type=jnp.float32) + bh_ref[...], 0.0)

    # single Kpack-wide packed logits block (layout built in pack_params):
    #   [0,K) head-1 logits | [K,2K) dup head-1 logits (-> softmax) | [2K,3K) head-2 logits
    block = jnp.dot(h.astype(compute_dtype), wo_ref[...],
                    preferred_element_type=jnp.float32) + bo_ref[...]

    # masked softmax over the duplicated head-1 lanes [smax_off, smax_off+K)
    col = jax.lax.broadcasted_iota(jnp.int32, block.shape, 1)
    smask = (col >= smax_off) & (col < smax_off + class_num)
    masked = jnp.where(smask, block, -1e30)
    m = jnp.max(masked, axis=-1, keepdims=True)
    e = jnp.where(smask, jnp.exp(masked - m), 0.0)
    denom = jnp.sum(e, axis=-1, keepdims=True)
    if approx_recip:
        smax = e * pl.reciprocal(denom, approx=True)      # EUP slot
    else:
        smax = e / denom                                  # exact (VPU divide)

    # merge softmax into its lanes and store the whole block once (lane-dense)
    pack_ref[...] = jnp.where(smask, smax, block)


# ---------------------------------------------------------------------------
# Parameters (PyTorch-style layout) and kernel-side packing
# ---------------------------------------------------------------------------
def init_params(key, in_channels=4, feat_dim=32, bottleneck_dim=64,
                width=64, class_num=16):
    ks = jax.random.split(key, 6)
    f32 = jnp.float32
    p = {}
    # backbone stand-in
    p["wb"] = 0.02 * jax.random.normal(ks[0], (in_channels, feat_dim), f32)
    p["bb"] = jnp.zeros((1, feat_dim), f32)
    # bottleneck: weight ~ N(0, 0.005), bias = 0.1 (per __init__)
    p["w1"] = 0.005 * jax.random.normal(ks[1], (feat_dim, bottleneck_dim), f32)
    p["b1"] = jnp.full((1, bottleneck_dim), 0.1, f32)
    # BatchNorm1d defaults: gamma=1, beta=0, running_mean=0, running_var=1
    p["gamma"] = jnp.ones((1, bottleneck_dim), f32)
    p["beta"] = jnp.zeros((1, bottleneck_dim), f32)
    p["rmean"] = jnp.zeros((1, bottleneck_dim), f32)
    p["rvar"] = jnp.ones((1, bottleneck_dim), f32)
    # classifier_layer: weights ~ N(0, 0.01), bias = 0
    p["wc1"] = 0.01 * jax.random.normal(ks[2], (bottleneck_dim, width), f32)
    p["bc1"] = jnp.zeros((1, width), f32)
    p["wc2"] = 0.01 * jax.random.normal(ks[3], (width, class_num), f32)
    p["bc2"] = jnp.zeros((1, class_num), f32)
    # classifier_layer_2: weights ~ N(0, 0.01), bias = 0
    p["wa1"] = 0.01 * jax.random.normal(ks[4], (bottleneck_dim, width), f32)
    p["ba1"] = jnp.zeros((1, width), f32)
    p["wa2"] = 0.01 * jax.random.normal(ks[5], (width, class_num), f32)
    p["ba2"] = jnp.zeros((1, class_num), f32)
    return p


def pack_params(p, *, eps=1e-5, compute_dtype=jnp.float32):
    """Fold backbone-proj + eval-mode BN + bottleneck Linear into one matmul,
    fuse both classifier heads (+softmax slot) into one 128-wide output block,
    pad all lane dims to multiples of 128."""
    f32 = jnp.float32
    C, F = p["wb"].shape
    _, D = p["w1"].shape
    _, W = p["wc1"].shape
    _, K = p["wc2"].shape
    Dp = _round_up(D, 128)
    Wp = _round_up(W, 64)                 # 2*Wp is a multiple of 128
    Kpack = _round_up(3 * K, 128)         # head1 | softmax(dup head1) | head2

    # eval-mode BatchNorm as an affine folded into the bottleneck Linear
    scale = p["gamma"] * jax.lax.rsqrt(p["rvar"] + eps)          # [1, D]
    w1s = p["w1"] * scale
    b1s = (p["b1"] - p["rmean"]) * scale + p["beta"]

    # fold the backbone stand-in projection into the bottleneck (no
    # nonlinearity in between): (pooled @ wb + bb) @ w1s + b1s == pooled @ wf + bf
    w_fold = p["wb"] @ w1s                                       # [C, D]
    b_fold = p["bb"] @ w1s + b1s                                 # [1, D]

    wf = jnp.zeros((C, Dp), f32).at[:, :D].set(w_fold)
    bf = jnp.zeros((1, Dp), f32).at[:, :D].set(b_fold)

    # fused dual-head hidden layer: wc1 || wa1
    wh = jnp.zeros((Dp, 2 * Wp), f32)
    wh = wh.at[:D, :W].set(p["wc1"]).at[:D, Wp:Wp + W].set(p["wa1"])
    bh = jnp.zeros((1, 2 * Wp), f32)
    bh = bh.at[:, :W].set(p["bc1"]).at[:, Wp:Wp + W].set(p["ba1"])

    # packed output block: head-1 logits at [0,K), duplicated head-1 columns at
    # [K,2K) (replaced by softmax in-kernel), head-2 logits at [2K,3K).
    wo = jnp.zeros((2 * Wp, Kpack), f32)
    wo = (wo.at[:W, 0:K].set(p["wc2"])
            .at[:W, K:2 * K].set(p["wc2"])
            .at[Wp:Wp + W, 2 * K:3 * K].set(p["wa2"]))
    bo = jnp.zeros((1, Kpack), f32)
    bo = (bo.at[:, 0:K].set(p["bc2"])
            .at[:, K:2 * K].set(p["bc2"])
            .at[:, 2 * K:3 * K].set(p["ba2"]))

    packed = dict(wf=wf.astype(compute_dtype), bf=bf,      # biases stay f32
                  wh=wh.astype(compute_dtype), bh=bh,
                  wo=wo.astype(compute_dtype), bo=bo)
    dims = dict(C=C, F=F, D=D, W=W, K=K, Dp=Dp, Wp=Wp, Kpack=Kpack,
                off_smax=K, off_adv=2 * K)
    return packed, dims


# ---------------------------------------------------------------------------
# Wrapper
# ---------------------------------------------------------------------------
def mdd_forward(x_nchw, packed, dims, *, batch_tile=512, approx_recip=False):
    B = x_nchw.shape[0]
    D, K = dims["D"], dims["K"]
    Dp, Kpack = dims["Dp"], dims["Kpack"]
    off_s, off_a = dims["off_smax"], dims["off_adv"]

    # Backbone stand-in global average pool stays in XLA so the fused kernel
    # only streams pooled activations (tiny) + VMEM-resident weights.
    pooled = jnp.mean(x_nchw.astype(jnp.float32), axis=(2, 3))     # [B, C]
    C = pooled.shape[1]

    # Batch tiling: single grid step for small/moderate B (step overhead
    # dominates here); for large B split into an EVEN number of tiles so both
    # v7x TensorCores get balanced work under the "parallel" annotation.
    Bp8 = _round_up(B, 8)
    if Bp8 <= batch_tile:
        TB = Bp8
    else:
        n_tiles = 2 * ((Bp8 + 2 * batch_tile - 1) // (2 * batch_tile))
        TB = _round_up((Bp8 + n_tiles - 1) // n_tiles, 8)
    Bp = _round_up(Bp8, TB)

    pooled_p = jnp.zeros((Bp, C), jnp.float32).at[:B].set(pooled)

    kernel = functools.partial(
        mdd_mlp_kernel, class_num=K, smax_off=off_s,
        approx_recip=approx_recip, compute_dtype=packed["wf"].dtype)

    def batch_spec(n):
        return pl.BlockSpec((TB, n), lambda i: (i, 0))

    def weight_spec(arr):
        # constant index_map across the grid -> single buffer is enough
        return pl.BlockSpec(arr.shape, lambda i: (0, 0),
                            pipeline_mode=pl.Buffered(1))

    w = packed
    in_specs = [batch_spec(C),
                weight_spec(w["wf"]), weight_spec(w["bf"]),
                weight_spec(w["wh"]), weight_spec(w["bh"]),
                weight_spec(w["wo"]), weight_spec(w["bo"])]
    out_shapes = (
        jax.ShapeDtypeStruct((Bp, Dp), jnp.float32),     # features (padded)
        jax.ShapeDtypeStruct((Bp, Kpack), jnp.float32),  # logits|softmax|adv (packed)
    )
    out_specs = (batch_spec(Dp), batch_spec(Kpack))

    feat_p, pack_p = pl.pallas_call(
        kernel,
        grid=(Bp // TB,),
        out_shape=out_shapes,
        in_specs=in_specs,
        out_specs=out_specs,
        compiler_params=pltpu.CompilerParams(
            dimension_semantics=("parallel",),          # megacore / v7x 2nd TC
            vmem_limit_bytes=16 * 1024 * 1024),         # far above actual use
    )(pooled_p, w["wf"], w["bf"], w["wh"], w["bh"], w["wo"], w["bo"])

    features = feat_p[:B, :D]
    outputs = pack_p[:B, 0:K]
    softmax_outputs = pack_p[:B, off_s:off_s + K]
    outputs_adv = pack_p[:B, off_a:off_a + K]
    return features, outputs, softmax_outputs, outputs_adv


# ---------------------------------------------------------------------------
# Pure-JAX reference (original, un-folded / un-fused parameters)
# ---------------------------------------------------------------------------
def mdd_forward_ref(x_nchw, p, eps=1e-5):
    x = x_nchw.astype(jnp.float32)
    pooled = jnp.mean(x, axis=(2, 3))
    base = pooled @ p["wb"] + p["bb"]
    h = base @ p["w1"] + p["b1"]
    h = (h - p["rmean"]) / jnp.sqrt(p["rvar"] + eps) * p["gamma"] + p["beta"]
    feat = jnp.maximum(h, 0.0)
    h1 = jnp.maximum(feat @ p["wc1"] + p["bc1"], 0.0)
    logits = h1 @ p["wc2"] + p["bc2"]
    smax = jax.nn.softmax(logits, axis=1)
    h2 = jnp.maximum(feat @ p["wa1"] + p["ba1"], 0.0)
    adv = h2 @ p["wa2"] + p["ba2"]
    return feat, logits, smax, adv


if __name__ == "__main__":
    key = jax.random.PRNGKey(0)
    kx, kp = jax.random.split(key)

    # small shapes: batch=2, channels=4, spatial=16x16,
    # feat_dim=32, bottleneck_dim=64, width=64, class_num=16
    x = jax.random.normal(kx, (2, 4, 16, 16), jnp.float32)   # NCHW
    params = init_params(kp, in_channels=4, feat_dim=32,
                         bottleneck_dim=64, width=64, class_num=16)
    refs = mdd_forward_ref(x, params)
    names = ("features", "outputs", "softmax_outputs", "outputs_adv")

    # f32 path (exact softmax division): tight tolerances
    packed, dims = pack_params(params)
    outs = jax.block_until_ready(mdd_forward(x, packed, dims))
    for name, got, want in zip(names, outs, refs):
        assert got.shape == want.shape, (name, got.shape, want.shape)
        np.testing.assert_allclose(np.asarray(got), np.asarray(want),
                                   rtol=1e-5, atol=1e-6, err_msg=name)

    # bf16-weight / f32-accumulate MXU path (v6e/v7x lever): loose tolerances
    packed_bf, dims_bf = pack_params(params, compute_dtype=jnp.bfloat16)
    outs_bf = jax.block_until_ready(
        mdd_forward(x, packed_bf, dims_bf, approx_recip=True))
    for name, got, want in zip(names, outs_bf, refs):
        assert got.shape == want.shape, (name, got.shape, want.shape)
        np.testing.assert_allclose(np.asarray(got), np.asarray(want),
                                   rtol=5e-2, atol=5e-3, err_msg=name + "_bf16")

    print("KERNEL_OK")
</pallas_src>

<mosaic_0001>
module attributes {stable_mosaic.version = 11 : i64} {
  func.func @mdd_mlp_kernel(%arg0: i32, %arg1: memref<8x4xf32, #tpu.memory_space<vmem>>, %arg2: memref<4x128xf32, #tpu.memory_space<vmem>>, %arg3: memref<1x128xf32, #tpu.memory_space<vmem>>, %arg4: memref<128x128xf32, #tpu.memory_space<vmem>>, %arg5: memref<1x128xf32, #tpu.memory_space<vmem>>, %arg6: memref<128x128xf32, #tpu.memory_space<vmem>>, %arg7: memref<1x128xf32, #tpu.memory_space<vmem>>, %arg8: memref<8x128xf32, #tpu.memory_space<vmem>>, %arg9: memref<8x128xf32, #tpu.memory_space<vmem>>) attributes {dimension_semantics = [#tpu.dimension_semantics<parallel>], iteration_bounds = array<i64: 1>, scalar_prefetch = 0 : i64, scratch_operands = 0 : i64, tpu.core_type = #tpu.core_type<tc>, window_params = [{transform_indices = @transform_0, window_bounds = array<i64: 8, 4>}, {pipeline_mode = #tpu.pipeline_mode<synchronous>, transform_indices = @transform_1, window_bounds = array<i64: 4, 128>}, {pipeline_mode = #tpu.pipeline_mode<synchronous>, transform_indices = @transform_2, window_bounds = array<i64: 1, 128>}, {pipeline_mode = #tpu.pipeline_mode<synchronous>, transform_indices = @transform_3, window_bounds = array<i64: 128, 128>}, {pipeline_mode = #tpu.pipeline_mode<synchronous>, transform_indices = @transform_4, window_bounds = array<i64: 1, 128>}, {pipeline_mode = #tpu.pipeline_mode<synchronous>, transform_indices = @transform_5, window_bounds = array<i64: 128, 128>}, {pipeline_mode = #tpu.pipeline_mode<synchronous>, transform_indices = @transform_6, window_bounds = array<i64: 1, 128>}, {transform_indices = @transform_7, window_bounds = array<i64: 8, 128>}, {transform_indices = @transform_8, window_bounds = array<i64: 8, 128>}]} {
    %c0 = arith.constant 0 : index
    %c0_0 = arith.constant 0 : index
    %0 = vector.load %arg1[%c0, %c0_0] : memref<8x4xf32, #tpu.memory_space<vmem>>, vector<8x4xf32>
    %c0_1 = arith.constant 0 : index
    %c0_2 = arith.constant 0 : index
    %1 = vector.load %arg2[%c0_1, %c0_2] : memref<4x128xf32, #tpu.memory_space<vmem>>, vector<4x128xf32>
    %cst = arith.constant dense<0.000000e+00> : vector<8x128xf32>
    %2 = tpu.matmul %0, %1, %cst {dimension_numbers = #tpu.dot_dimension_numbers<[1], [0], [0], [1], [0, 0, 1, 1], [], []>} : vector<8x4xf32>, vector<4x128xf32>, vector<8x128xf32> -> vector<8x128xf32>
    %c0_3 = arith.constant 0 : index
    %c0_4 = arith.constant 0 : index
    %3 = vector.load %arg3[%c0_3, %c0_4] : memref<1x128xf32, #tpu.memory_space<vmem>>, vector<1x128xf32>
    %4 = vector.broadcast %3 : vector<1x128xf32> to vector<8x128xf32>
    %5 = arith.addf %2, %4 : vector<8x128xf32>
    %cst_5 = arith.constant 0.000000e+00 : f32
    %6 = vector.broadcast %cst_5 : f32 to vector<8x128xf32>
    %7 = arith.maximumf %5, %6 : vector<8x128xf32>
    %c0_6 = arith.constant 0 : index
    %c0_7 = arith.constant 0 : index
    %8 = vector.load %arg8[%c0_6, %c0_7] : memref<8x128xf32, #tpu.memory_space<vmem>>, vector<8x128xf32>
    tpu.vector_store %arg8[%c0_6, %c0_7], %7 {strides = array<i32>} : memref<8x128xf32, #tpu.memory_space<vmem>>, vector<8x128xf32>,
    %c0_8 = arith.constant 0 : index
    %c0_9 = arith.constant 0 : index
    %9 = vector.load %arg4[%c0_8, %c0_9] : memref<128x128xf32, #tpu.memory_space<vmem>>, vector<128x128xf32>
    %cst_10 = arith.constant dense<0.000000e+00> : vector<8x128xf32>
    %10 = tpu.matmul %7, %9, %cst_10 {dimension_numbers = #tpu.dot_dimension_numbers<[1], [0], [0], [1], [0, 0, 1, 1], [], []>} : vector<8x128xf32>, vector<128x128xf32>, vector<8x128xf32> -> vector<8x128xf32>
    %c0_11 = arith.constant 0 : index
    %c0_12 = arith.constant 0 : index
    %11 = vector.load %arg5[%c0_11, %c0_12] : memref<1x128xf32, #tpu.memory_space<vmem>>, vector<1x128xf32>
    %12 = vector.broadcast %11 : vector<1x128xf32> to vector<8x128xf32>
    %13 = arith.addf %10, %12 : vector<8x128xf32>
    %cst_13 = arith.constant 0.000000e+00 : f32
    %14 = vector.broadcast %cst_13 : f32 to vector<8x128xf32>
    %15 = arith.maximumf %13, %14 : vector<8x128xf32>
    %c0_14 = arith.constant 0 : index
    %c0_15 = arith.constant 0 : index
    %16 = vector.load %arg6[%c0_14, %c0_15] : memref<128x128xf32, #tpu.memory_space<vmem>>, vector<128x128xf32>
    %cst_16 = arith.constant dense<0.000000e+00> : vector<8x128xf32>
    %17 = tpu.matmul %15, %16, %cst_16 {dimension_numbers = #tpu.dot_dimension_numbers<[1], [0], [0], [1], [0, 0, 1, 1], [], []>} : vector<8x128xf32>, vector<128x128xf32>, vector<8x128xf32> -> vector<8x128xf32>
    %c0_17 = arith.constant 0 : index
    %c0_18 = arith.constant 0 : index
    %18 = vector.load %arg7[%c0_17, %c0_18] : memref<1x128xf32, #tpu.memory_space<vmem>>, vector<1x128xf32>
    %19 = vector.broadcast %18 : vector<1x128xf32> to vector<8x128xf32>
    %20 = arith.addf %17, %19 : vector<8x128xf32>
    %21 = tpu.iota {dimensions = array<i32: 1>} : vector<8x128xi32>
    %c16_i32 = arith.constant 16 : i32
    %22 = vector.broadcast %c16_i32 : i32 to vector<8x128xi32>
    %23 = arith.cmpi sge, %21, %22 : vector<8x128xi32>
    %c32_i32 = arith.constant 32 : i32
    %24 = vector.broadcast %c32_i32 : i32 to vector<8x128xi32>
    %25 = arith.cmpi slt, %21, %24 : vector<8x128xi32>
    %26 = arith.andi %23, %25 : vector<8x128xi1>
    %cst_19 = arith.constant -1.000000e+30 : f32
    %27 = vector.broadcast %cst_19 : f32 to vector<8x128xf32>
    %28 = arith.select %26, %20, %27 : vector<8x128xi1>, vector<8x128xf32>
    %cst_20 = arith.constant dense<0xFF800000> : vector<8xf32>
    %29 = vector.multi_reduction <maximumf>, %28, %cst_20 [1] : vector<8x128xf32> to vector<8xf32>
    %30 = vector.shape_cast %29 : vector<8xf32> to vector<8x1xf32>
    %31 = vector.broadcast %30 : vector<8x1xf32> to vector<8x128xf32>
    %32 = arith.subf %28, %31 : vector<8x128xf32>
    %33 = math.exp %32 : vector<8x128xf32>
    %cst_21 = arith.constant 0.000000e+00 : f32
    %34 = vector.broadcast %cst_21 : f32 to vector<8x128xf32>
    %35 = arith.select %26, %33, %34 : vector<8x128xi1>, vector<8x128xf32>
    %cst_22 = arith.constant dense<0.000000e+00> : vector<8xf32>
    %36 = vector.multi_reduction <add>, %35, %cst_22 [1] : vector<8x128xf32> to vector<8xf32>
    %37 = vector.shape_cast %36 : vector<8xf32> to vector<8x1xf32>
    %38 = vector.broadcast %37 : vector<8x1xf32> to vector<8x128xf32>
    %39 = arith.divf %35, %38 : vector<8x128xf32>
    %40 = arith.select %26, %39, %20 : vector<8x128xi1>, vector<8x128xf32>
    %c0_23 = arith.constant 0 : index
    %c0_24 = arith.constant 0 : index
    %41 = vector.load %arg9[%c0_23, %c0_24] : memref<8x128xf32, #tpu.memory_space<vmem>>, vector<8x128xf32>
    tpu.vector_store %arg9[%c0_23, %c0_24], %40 {strides = array<i32>} : memref<8x128xf32, #tpu.memory_space<vmem>>, vector<8x128xf32>,
    return
  }
  func.func @transform_0(%arg0: i32) -> (i32, i32) {
    %c0_i32 = arith.constant 0 : i32
    %c0_i32_0 = arith.constant 0 : i32
    return %arg0, %c0_i32 : i32, i32
  }
  func.func @transform_1(%arg0: i32) -> (i32, i32) {
    %c0_i32 = arith.constant 0 : i32
    %c0_i32_0 = arith.constant 0 : i32
    %c0_i32_1 = arith.constant 0 : i32
    return %c0_i32, %c0_i32_0 : i32, i32
  }
  func.func @transform_2(%arg0: i32) -> (i32, i32) {
    %c0_i32 = arith.constant 0 : i32
    %c0_i32_0 = arith.constant 0 : i32
    %c0_i32_1 = arith.constant 0 : i32
    return %c0_i32, %c0_i32_0 : i32, i32
  }
  func.func @transform_3(%arg0: i32) -> (i32, i32) {
    %c0_i32 = arith.constant 0 : i32
    %c0_i32_0 = arith.constant 0 : i32
    %c0_i32_1 = arith.constant 0 : i32
    return %c0_i32, %c0_i32_0 : i32, i32
  }
  func.func @transform_4(%arg0: i32) -> (i32, i32) {
    %c0_i32 = arith.constant 0 : i32
    %c0_i32_0 = arith.constant 0 : i32
    %c0_i32_1 = arith.constant 0 : i32
    return %c0_i32, %c0_i32_0 : i32, i32
  }
  func.func @transform_5(%arg0: i32) -> (i32, i32) {
    %c0_i32 = arith.constant 0 : i32
    %c0_i32_0 = arith.constant 0 : i32
    %c0_i32_1 = arith.constant 0 : i32
    return %c0_i32, %c0_i32_0 : i32, i32
  }
  func.func @transform_6(%arg0: i32) -> (i32, i32) {
    %c0_i32 = arith.constant 0 : i32
    %c0_i32_0 = arith.constant 0 : i32
    %c0_i32_1 = arith.constant 0 : i32
    return %c0_i32, %c0_i32_0 : i32, i32
  }
  func.func @transform_7(%arg0: i32) -> (i32, i32) {
    %c0_i32 = arith.constant 0 : i32
    %c0_i32_0 = arith.constant 0 : i32
    return %arg0, %c0_i32 : i32, i32
  }
  func.func @transform_8(%arg0: i32) -> (i32, i32) {
    %c0_i32 = arith.constant 0 : i32
    %c0_i32_0 = arith.constant 0 : i32
    return %arg0, %c0_i32 : i32, i32
  }
}

</mosaic_0001>

<bundles_post_ra>
// kernel: tpu_custom_call.1
= control target key start
LH: loop header
LB: loop body
LE: loop exit
PB: predicated region body
PF: predicated region fallthrough
CT: control target
= control target key end

     0   :  { %14 = vsyncpa [#allocation3], 0  ;;  %s801_s0 = inlined_call_operand.vmem [shape: f32[8,4], index: 0, kind: input, shape index: {}]   ;;  %s802_s1 = inlined_call_operand.vmem [shape: f32[4,128], index: 1, kind: input, shape index: {}]   ;;  %s803_s2 = inlined_call_operand.vmem [shape: f32[1,128], index: 2, kind: input, shape index: {}]   ;;  %s804_s3 = inlined_call_operand.hbm [shape: f32[128,128], index: 3, kind: input, shape index: {}]   ;;  %s805_s4 = inlined_call_operand.vmem [shape: f32[1,128], index: 4, kind: input, shape index: {}]   ;;  %s806_s5 = inlined_call_operand.hbm [shape: f32[128,128], index: 5, kind: input, shape index: {}]   ;;  %s807_s6 = inlined_call_operand.vmem [shape: f32[1,128], index: 6, kind: input, shape index: {}]   ;;  %s808_s7 = inlined_call_operand.hbm [shape: f32[8,128], index: 7, kind: output, shape index: {0}]   ;;  %s809_s8 = inlined_call_operand.hbm [shape: f32[8,128], index: 8, kind: output, shape index: {1}]  }
   0x1   :  { %15 = vsyncpa [#allocation6], 0 }
   0x2   :  { %16 = vsyncpa [#allocation4], 0 }
   0x3   :  { %17 = vsyncpa [#allocation9], 0  ;;  %s655_s27 = smov [#allocation2]   ;;  %s559_s9 = scalar_lea.hbm %s804_s3, 2048 }
   0x4   :  { %s29_s28 = sshll.u32 %s655_s27, 4  ;;  %p560_p0 = scmp.ne.s32.totalorder %s804_s3, %s559_s9  ;;  %s30_s28 = int_to_ptr.vmem [resolvable:$true] %s29_s28 }
   0x5   :  { %p563_p1 = scmp.lt.u32.totalorder %s559_s9, %s804_s3 }
   0x7   :  { %p565_p2 = pnand %p563_p1, %p560_p0 }
   0x9   :  { %568 = shalt.err (!%p565_p2)
}
   0xa   :  { %s569_s14 = scalar_lea.vmem %s30_s28, 2048  ;;  %p574_p4 = scmp.lt.s32.totalorder %s30_s28, %s30_s28 }
   0xb   :  { %p570_p3 = scmp.ne.s32.totalorder %s30_s28, %s569_s14  ;;  %p575_p5 = scmp.lt.s32.totalorder %s569_s14, %s569_s14 }
   0xd   :  { %p576_p6 = por %p575_p5, %p574_p4 }
   0xf   :  { %p577_p7 = pnand %p576_p6, %p570_p3 }
  0x11   :  { %580 = shalt.err (!%p577_p7)
}
  0x12   :  { %s656_s15 = smov 128   ;;  %s657_s16 = smov 8  }
  0x13   :  { %35 = dma.hbm_to_vmem [thread:$0]  %s804_s3, 2048, %s30_s28, [#allocation3], %s656_s15, %s656_s15, %s657_s16  }
  0x14   :  { %s658_s19 = smov [#allocation5]   ;;  %s581_s23 = scalar_lea.hbm %s806_s5, 2048 }
  0x15   :  { %s43_s20 = sshll.u32 %s658_s19, 4  ;;  %p582_p8 = scmp.ne.s32.totalorder %s806_s5, %s581_s23  ;;  %s44_s20 = int_to_ptr.vmem [resolvable:$true] %s43_s20 }
  0x16   :  { %p585_p9 = scmp.lt.u32.totalorder %s581_s23, %s806_s5 }
  0x18   :  { %p587_p10 = pnand %p585_p9, %p582_p8 }
  0x1a   :  { %590 = shalt.err (!%p587_p10)
}
  0x1b   :  { %s591_s29 = scalar_lea.vmem %s44_s20, 2048  ;;  %p596_p12 = scmp.lt.s32.totalorder %s44_s20, %s44_s20 }
  0x1c   :  { %p592_p11 = scmp.ne.s32.totalorder %s44_s20, %s591_s29  ;;  %p597_p13 = scmp.lt.s32.totalorder %s591_s29, %s591_s29 }
  0x1e   :  { %p598_p0 = por %p597_p13, %p596_p12 }
  0x20   :  { %p599_p1 = pnand %p598_p0, %p592_p11 }
  0x22   :  { %602 = shalt.err (!%p599_p1)
}
  0x23   :  { %49 = dma.hbm_to_vmem [thread:$0]  %s806_s5, 2048, %s44_s20, [#allocation6], %s656_s15, %s656_s15, %s657_s16  }
  0x24   :  { %647 = dma.done.wait [#allocation3], 2048  }
  0x25   :  { %648 = vsyncadd [#allocation3], 4294965248 }
  0x26   :  { %649 = dma.done.wait [#allocation6], 2048  }
  0x27   :  { %650 = vsyncadd [#allocation6], 4294965248  ;;  %v659_v0 = vmov 0.0   ;;  %vm660_vm0 = vmmov 0   ;;  %v661_v1 = vmov 0.0|0.0   ;;  %vm71_vm1 = vcmask 1043456  }
  0x28   :  { %423 = vmatprep.subr.mxu0 %v659_v0  ;;  %425 = vmatprep.mubr.msk.f32.mxu0 %vm660_vm0, %v659_v0  ;;  %vm67_vm2 = vcmask 31744   ;;  %v59_v2 = vld [vmem:[%s802_s1] sm:$0xf]  ;;  %v148_v5 = vld [vmem:[#allocation2 + $0x8] sm:$0xff]  ;;  %v149_v6 = vld [vmem:[#allocation2 + $0x10] sm:$0xff]  ;;  %v334_v62 = vlaneseq }
  0x29   :  { %498 = vmatprep.subr.bf16.mxu1 %v661_v1  ;;  %460 = vmatprep.mubr.msk.f32.mxu1 %vm660_vm0, %v659_v0  ;;  %v58_v3 = vld [vmem:[%s801_s0] sm:$0xff]  ;;  %v150_v7 = vld [vmem:[#allocation2 + $0x18] sm:$0xff]  ;;  %v152_v11 = vld [vmem:[#allocation2 + $0x28] sm:$0xff] }
  0x2a   :  { %v147_v4 = vld [vmem:[#allocation2] sm:$0xff]  ;;  %424 = vmatpush3.msk.msra.mxu0 %vm71_vm1, %v59_v2  ;;  %v502_v9 = vpack.c.bf16 %v150_v7, %v149_v6  ;;  %v153_v13 = vld [vmem:[#allocation2 + $0x30] sm:$0xff]  ;;  %v154_v14 = vld [vmem:[#allocation2 + $0x38] sm:$0xff]  ;;  %v335_v63 = vand.u32 127, %v334_v62 }
  0x2b   :  { %426 = vmatmul.mubr.msk.f32.vlgmr.msra.gmra.mrb[0].mxu0 %vm67_vm2, %v58_v3  ;;  %v499_v8 = vpack.c.bf16 %v148_v5, %v147_v4  ;;  %522 = vmatprep.subr.bf16.mxu0 %v661_v1  ;;  %v151_v10 = vld [vmem:[#allocation2 + $0x20] sm:$0xff]  ;;  %v508_v15 = vpack.c.bf16 %v154_v14, %v153_v13  ;;  %v156_v17 = vld [vmem:[#allocation2 + $0x48] sm:$0xff]  ;;  %v157_v19 = vld [vmem:[#allocation2 + $0x50] sm:$0xff] }
  0x2c   :  { %495 = vmatprep.mubr.msk.f32.mxu0 %vm660_vm0, %v659_v0  ;;  %v505_v12 = vpack.c.bf16 %v152_v11, %v151_v10  ;;  %v155_v16 = vld [vmem:[#allocation2 + $0x40] sm:$0xff]  ;;  %v158_v20 = vld [vmem:[#allocation2 + $0x58] sm:$0xff]  ;;  %v160_v23 = vld [vmem:[#allocation2 + $0x68] sm:$0xff]  ;;  %vm336_vm3 = vcmp.ge.s32.totalorder %v335_v63, 16  ;;  %vm337_vm4 = vcmp.lt.s32.totalorder %v335_v63, 32 }
  0x2d   :  { %500 = vmatpush3.bf16.msra.mxu1 %v499_v8  ;;  %v511_v18 = vpack.c.bf16 %v156_v17, %v155_v16  ;;  %v514_v21 = vpack.c.bf16 %v158_v20, %v157_v19  ;;  %v159_v22 = vld [vmem:[#allocation2 + $0x60] sm:$0xff]  ;;  %v161_v25 = vld [vmem:[#allocation2 + $0x70] sm:$0xff]  ;;  %v162_v26 = vld [vmem:[#allocation2 + $0x78] sm:$0xff] }
  0x2e   :  { %501 = vmatprep.subr.bf16.mxu1 %v661_v1  ;;  %v517_v24 = vpack.c.bf16 %v160_v23, %v159_v22  ;;  %v520_v27 = vpack.c.bf16 %v162_v26, %v161_v25  ;;  %v241_v28 = vld [vmem:[#allocation5] sm:$0xff]  ;;  %v242_v29 = vld [vmem:[#allocation5 + $0x8] sm:$0xff]  ;;  %v243_v30 = vld [vmem:[#allocation5 + $0x10] sm:$0xff] }
  0x2f   :  { %v523_v31 = vpack.c.bf16 %v242_v29, %v241_v28  ;;  %v244_v32 = vld [vmem:[#allocation5 + $0x18] sm:$0xff]  ;;  %v245_v34 = vld [vmem:[#allocation5 + $0x20] sm:$0xff]  ;;  %v246_v35 = vld [vmem:[#allocation5 + $0x28] sm:$0xff] }
  0x30   :  { %v526_v33 = vpack.c.bf16 %v244_v32, %v243_v30  ;;  %v529_v36 = vpack.c.bf16 %v246_v35, %v245_v34  ;;  %v247_v37 = vld [vmem:[#allocation5 + $0x30] sm:$0xff]  ;;  %v248_v38 = vld [vmem:[#allocation5 + $0x38] sm:$0xff]  ;;  %v249_v40 = vld [vmem:[#allocation5 + $0x40] sm:$0xff] }
  0x31   :  { %503 = vmatpush3.bf16.msra.mxu1 %v502_v9  ;;  %524 = vmatpush3.bf16.msra.mxu0 %v523_v31  ;;  %v532_v39 = vpack.c.bf16 %v248_v38, %v247_v37  ;;  %v250_v41 = vld [vmem:[#allocation5 + $0x48] sm:$0xff]  ;;  %v251_v43 = vld [vmem:[#allocation5 + $0x50] sm:$0xff]  ;;  %v252_v44 = vld [vmem:[#allocation5 + $0x58] sm:$0xff] }
  0x32   :  { %504 = vmatprep.subr.bf16.mxu1 %v661_v1  ;;  %525 = vmatprep.subr.bf16.mxu0 %v661_v1  ;;  %v535_v42 = vpack.c.bf16 %v250_v41, %v249_v40  ;;  %v538_v45 = vpack.c.bf16 %v252_v44, %v251_v43  ;;  %v253_v46 = vld [vmem:[#allocation5 + $0x60] sm:$0xff]  ;;  %v254_v47 = vld [vmem:[#allocation5 + $0x68] sm:$0xff]  ;;  %v255_v54 = vld [vmem:[#allocation5 + $0x70] sm:$0xff] }
  0x33   :  { %v541_v48 = vpack.c.bf16 %v254_v47, %v253_v46  ;;  %v382_v49 = vld [vmem:[%s803_s2] ss:$0 sm:$0xff]  ;;  %v256_v55 = vld [vmem:[#allocation5 + $0x78] sm:$0xff]  ;;  %vm767_vm5 = vmand %vm336_vm3, %vm337_vm4 }
  0x34   :  { %v544_v56 = vpack.c.bf16 %v256_v55, %v255_v54  ;;  %v385_v57 = vld [vmem:[%s805_s4] ss:$0 sm:$0xff]  ;;  %s662_s4 = smov [#allocation7]  }
  0x35   :  { %506 = vmatpush3.bf16.msra.mxu1 %v505_v12  ;;  %527 = vmatpush3.bf16.msra.mxu0 %v526_v33  ;;  %v386_v0 = vld [vmem:[%s807_s6] ss:$0 sm:$0xff]  ;;  %s358_s6 = sshll.u32 %s662_s4, 4  ;;  %s359_s6 = int_to_ptr.vmem [resolvable:$true] %s358_s6 }
  0x36   :  { %507 = vmatprep.subr.bf16.mxu1 %v661_v1  ;;  %528 = vmatprep.subr.bf16.mxu0 %v661_v1  ;;  %s603_s14 = scalar_lea.vmem %s359_s6, 128  ;;  %p608_p3 = scmp.lt.s32.totalorder %s359_s6, %s359_s6 }
  0x37   :  { %p604_p2 = scmp.ne.s32.totalorder %s359_s6, %s603_s14  ;;  %p609_p4 = scmp.lt.s32.totalorder %s603_s14, %s603_s14 }
  0x39   :  { %509 = vmatpush3.bf16.msra.mxu1 %v508_v15  ;;  %530 = vmatpush3.bf16.msra.mxu0 %v529_v36  ;;  %p610_p5 = por %p609_p4, %p608_p3 }
  0x3a   :  { %510 = vmatprep.subr.bf16.mxu1 %v661_v1  ;;  %531 = vmatprep.subr.bf16.mxu0 %v661_v1 }
  0x3b   :  { %p611_p6 = pnand %p610_p5, %p604_p2 }
  0x3d   :  { %512 = vmatpush3.bf16.msra.mxu1 %v511_v18  ;;  %533 = vmatpush3.bf16.msra.mxu0 %v532_v39 }
  0x3e   :  { %513 = vmatprep.subr.bf16.mxu1 %v661_v1  ;;  %534 = vmatprep.subr.bf16.mxu0 %v661_v1 }
  0x41   :  { %515 = vmatpush3.bf16.msra.mxu1 %v514_v21  ;;  %536 = vmatpush3.bf16.msra.mxu0 %v535_v42 }
  0x42   :  { %516 = vmatprep.subr.bf16.mxu1 %v661_v1  ;;  %537 = vmatprep.subr.bf16.mxu0 %v661_v1 }
  0x45   :  { %518 = vmatpush3.bf16.msra.mxu1 %v517_v24  ;;  %539 = vmatpush3.bf16.msra.mxu0 %v538_v45 }
  0x46   :  { %519 = vmatprep.subr.bf16.mxu1 %v661_v1  ;;  %540 = vmatprep.subr.bf16.mxu0 %v661_v1 }
  0x49   :  { %521 = vmatpush3.bf16.msra.mxu1 %v520_v27  ;;  %542 = vmatpush3.bf16.msra.mxu0 %v541_v48 }
  0x4a   :  { %543 = vmatprep.subr.bf16.mxu0 %v661_v1 }
  0x4d   :  { %545 = vmatpush3.bf16.msra.mxu0 %v544_v56 }
  0xfe   :  { %v141_v50 = vpop.f32.mrb[0].mxu0 }
  0xff   :  { %v142_v51 = vadd.f32 %v382_v49, %v141_v50  ;;  %v427_v52 = vpop.f32.mrb[1].mxu0 }
 0x101   :  { %v145_v53 = vmax.f32 %v142_v51, 0.0 }
 0x103   :  { %146 = vst [vmem:[#allocation7] sm:$0xff] %v145_v53  ;;  %461 = vmatmul.mubr.f32.vlgmr.msra.gmra.mrb[0].mxu1 %v145_v53 }
 0x1d6   :  { %v236_v58 = vpop.f32.mrb[0].mxu1 }
 0x1d7   :  { %v237_v59 = vadd.f32 %v385_v57, %v236_v58  ;;  %v462_v60 = vpop.f32.mrb[1].mxu1 }
 0x1d9   :  { %v240_v61 = vmax.f32 %v237_v59, 0.0 }
 0x1db   :  { %496 = vmatmul.mubr.f32.vlgmr.msra.gmra.mrb[2].mxu0 %v240_v61 }
 0x2ae   :  { %v330_v1 = vpop.f32.mrb[2].mxu0 }
 0x2af   :  { %v331_v3 = vadd.f32 %v386_v0, %v330_v1  ;;  %v497_v4 = vpop.f32.mrb[3].mxu0 }
 0x2b1   :  { %v339_v5 = vsel %vm767_vm5, %v331_v3, -1e+30 }
 0x2b2   :  { %340 = vmax.xlane.f32.xlu0 %v339_v5 }
 0x33f   :  { %v341_v6 = vpop.xlane.xlu0 %340 }
 0x340   :  { %v342_v7 = vsub.f32 %v339_v5, %v341_v6 }
 0x342   :  { %v343_v8 = vmul.f32 1.442695, %v342_v7 }
 0x344   :  { %555 = vpow2.f32 %v343_v8 }
 0x34e   :  { %v556_v9 = vpop.eup %555 }
 0x34f   :  { %v345_v10 = vsel %vm767_vm5, %v556_v9, 0.0 }
 0x350   :  { %346 = vadd.xlane.f32.xlu0 %v345_v10 }
 0x351   :  { %614 = shalt.err (!%p611_p6)
}
 0x352   :  { %s615_s17 = scalar_lea.hbm %s808_s7, 128 }
 0x353   :  { %p616_p7 = scmp.ne.s32.totalorder %s808_s7, %s615_s17  ;;  %p619_p8 = scmp.lt.u32.totalorder %s615_s17, %s808_s7 }
 0x355   :  { %p621_p9 = pnand %p619_p8, %p616_p7 }
 0x357   :  { %624 = shalt.err (!%p621_p9)
}
 0x358   :  { %361 = dma.vmem_to_hbm [thread:$0]  %s359_s6, 128, %s808_s7, [#allocation4]  }
 0x359   :  { %s663_s24 = smov [#allocation8]  }
 0x35a   :  { %s368_s25 = sshll.u32 %s663_s24, 4  ;;  %s369_s25 = int_to_ptr.vmem [resolvable:$true] %s368_s25 }
 0x35b   :  { %s625_s26 = scalar_lea.vmem %s369_s25, 128  ;;  %p630_p11 = scmp.lt.s32.totalorder %s369_s25, %s369_s25 }
 0x35c   :  { %p626_p10 = scmp.ne.s32.totalorder %s369_s25, %s625_s26  ;;  %p631_p12 = scmp.lt.s32.totalorder %s625_s26, %s625_s26 }
 0x35e   :  { %p632_p13 = por %p631_p12, %p630_p11 }
 0x360   :  { %p633_p0 = pnand %p632_p13, %p626_p10 }
 0x3dd   :  { %v347_v11 = vpop.xlane.xlu0 %346 }
 0x3de   :  { %557 = vrcp.f32 %v347_v11 }
 0x3e8   :  { %v558_v12 = vpop.eup %557 }
 0x3e9   :  { %v349_v13 = vmul.f32 %v558_v12, %v345_v10 }
 0x3eb   :  { %v350_v14 = vsel %vm767_vm5, %v349_v13, %v331_v3 }
 0x3ec   :  { %351 = vst [vmem:[#allocation8] sm:$0xff] %v350_v14 }
 0x3ed   :  { %636 = shalt.err (!%p633_p0)
}
 0x3ee   :  { %s637_s29 = scalar_lea.hbm %s809_s8, 128 }
 0x3ef   :  { %p638_p1 = scmp.ne.s32.totalorder %s809_s8, %s637_s29  ;;  %p641_p2 = scmp.lt.u32.totalorder %s637_s29, %s809_s8 }
 0x3f1   :  { %p643_p3 = pnand %p641_p2, %p638_p1 }
 0x3f3   :  { %646 = shalt.err (!%p643_p3)
}
 0x3f4   :  { %371 = dma.vmem_to_hbm [thread:$0]  %s369_s25, 128, %s809_s8, [#allocation9]  }
 0x3f5   :  { %651 = dma.done.wait [#allocation4], 128  }
 0x3f6   :  { %652 = vsyncadd [#allocation4], 4294967168 }
 0x3f7   :  { %653 = dma.done.wait [#allocation9], 128  }
 0x3f8   :  { %654 = vsyncadd [#allocation9], 4294967168 }
 0x3f9   :  { %378 = vsyncpa [#allocation3], 1 }
 0x3fa   :  { %379 = vsyncpa [#allocation6], 1 }
 0x3fb   :  { %380 = vsyncpa [#allocation4], 1 }
 0x3fc   :  { %381 = vsyncpa [#allocation9], 1 }

</bundles_post_ra>
